<compile_context>
chip_gen: v6e
topology: v6e:2x2x1
jax: 0.10.0
libtpu: 0.0.40
codegen_flags: <defaults>
</compile_context>

<pallas_src>
import functools

import jax
import jax.numpy as jnp
from jax.experimental import pallas as pl
from jax.experimental.pallas import tpu as pltpu


def _mlp_block_kernel(x_ref, w1_ref, b1_ref, w2_ref, b2_ref, o_ref, *,
                      compute_dtype):
    # First linear: (TILE_N, D) @ (D, M) on the MXU, f32 accumulation,
    # bias added in f32 on the VPU (free filler under an MXU-bound kernel).
    x = x_ref[...].astype(compute_dtype)
    h = jnp.dot(x, w1_ref[...].astype(compute_dtype),
                preferred_element_type=jnp.float32)
    h = h + b1_ref[...].astype(jnp.float32)

    # GELU intentionally NOT applied: in the reference `nn.GELU(x)` constructs
    # a module and discards it, so no activation is applied.
    # Dropout: identity (see TODO at top of file).

    # Second linear: (TILE_N, M) @ (M, D), f32 accumulation, f32 bias add.
    h = h.astype(compute_dtype)
    out = jnp.dot(h, w2_ref[...].astype(compute_dtype),
                  preferred_element_type=jnp.float32)
    out = out + b2_ref[...].astype(jnp.float32)
    o_ref[...] = out.astype(o_ref.dtype)


def mlp_block(x, w1, b1, w2, b2, *, tile_n=512,
              compute_dtype=jnp.bfloat16,
              vmem_limit_bytes=56 * 1024 * 1024):
    """MlpBlock forward: out = (x @ W1 + b1) @ W2 + b2 (no GELU, dropout=id).

    x: (..., D); W1: (D, M); b1: (M,) or (1, M); W2: (M, D); b2: (D,) or (1, D).
    """
    orig_shape = x.shape
    D = orig_shape[-1]
    M = w1.shape[1]
    N = 1
    for d in orig_shape[:-1]:
        N *= d
    x2d = x.reshape(N, D)

    # Row tile: multiple of 8 (sublane), 512 by default (overhead amortization
    # vs. VMEM pressure sweet spot), capped by the (8-rounded) row count.
    tn = min(tile_n, pl.cdiv(N, 8) * 8)
    grid_n = pl.cdiv(N, tn)   # final block may be partial; Pallas masks writes

    # Store the big weight matrices in the compute dtype (bf16 halves HBM
    # weight traffic and the resident-VMEM footprint). Biases stay f32, 2-D.
    w1_c = w1.astype(compute_dtype)
    w2_c = w2.astype(compute_dtype)
    b1_2d = b1.reshape(1, M).astype(jnp.float32)
    b2_2d = b2.reshape(1, D).astype(jnp.float32)

    kernel = functools.partial(_mlp_block_kernel, compute_dtype=compute_dtype)

    wbytes = jnp.dtype(compute_dtype).itemsize
    cost = pl.CostEstimate(
        flops=4 * N * D * M,                      # two (N,D,M) matmuls
        transcendentals=0,
        bytes_accessed=int(N * D * x.dtype.itemsize          # activations in
                           + 2 * D * M * wbytes              # W1 + W2
                           + (M + D) * 4                     # biases
                           + N * D * x.dtype.itemsize),      # output
    )

    # NOTE: if M were very large (>> 4096) a second "arbitrary" grid axis over
    # M with an f32 accumulator scratch would bound the h intermediate; not
    # needed at ViT sizes (768 / 3072).
    out2d = pl.pallas_call(
        kernel,
        out_shape=jax.ShapeDtypeStruct((N, D), x.dtype),
        grid=(grid_n,),
        in_specs=[
            pl.BlockSpec((tn, D), lambda i: (i, 0)),   # activations: tiled over rows
            pl.BlockSpec((D, M), lambda i: (0, 0)),    # W1: VMEM-resident
            pl.BlockSpec((1, M), lambda i: (0, 0)),    # b1: VMEM-resident
            pl.BlockSpec((M, D), lambda i: (0, 0)),    # W2: VMEM-resident
            pl.BlockSpec((1, D), lambda i: (0, 0)),    # b2: VMEM-resident
        ],
        out_specs=pl.BlockSpec((tn, D), lambda i: (i, 0)),
        compiler_params=pltpu.CompilerParams(
            # Row tiles are independent -> shard grid steps across both
            # TensorCores on v7x; harmless elsewhere.
            dimension_semantics=("parallel",),
            vmem_limit_bytes=vmem_limit_bytes,
        ),
        cost_estimate=cost,
    )(x2d, w1_c, b1_2d, w2_c, b2_2d)

    return out2d.reshape(orig_shape)


if __name__ == "__main__":
    # Small shapes consistent with a ViT MLP block; feature dims are multiples
    # of 128 so the lane dimension / MXU are fully fed (real ViT: 768 / 3072).
    batch, seq = 2, 8
    out_dim, mlp_dim = 128, 256   # "out_dim" is the token feature dim

    key = jax.random.PRNGKey(0)
    k_x, k_w1, k_b1, k_w2, k_b2 = jax.random.split(key, 5)

    x = jax.random.normal(k_x, (batch, seq, out_dim), dtype=jnp.float32)

    # Deterministic parameter init (torch Linear-style uniform bounds).
    lim1 = 1.0 / jnp.sqrt(out_dim)
    lim2 = 1.0 / jnp.sqrt(mlp_dim)
    w1 = jax.random.uniform(k_w1, (out_dim, mlp_dim), jnp.float32, -lim1, lim1)
    b1 = jax.random.uniform(k_b1, (1, mlp_dim), jnp.float32, -lim1, lim1)
    w2 = jax.random.uniform(k_w2, (mlp_dim, out_dim), jnp.float32, -lim2, lim2)
    b2 = jax.random.uniform(k_b2, (1, out_dim), jnp.float32, -lim2, lim2)

    # Reference in plain JAX (no GELU, dropout=identity).
    ref = (x.reshape(-1, out_dim) @ w1 + b1) @ w2 + b2
    ref = ref.reshape(batch, seq, out_dim)

    # f32 compute path: tight check of the kernel structure / tiling.
    out_f32 = mlp_block(x, w1, b1, w2, b2, compute_dtype=jnp.float32)
    out_f32 = jax.block_until_ready(out_f32)
    assert out_f32.shape == (batch, seq, out_dim)
    assert jnp.allclose(out_f32, ref, atol=1e-5, rtol=1e-5)

    # bf16 compute path (the fast path on v6e/v7x MXU): f32 accumulation, so
    # only input/weight bf16 quantization error remains -> looser tolerance.
    out_bf16 = mlp_block(x, w1, b1, w2, b2, compute_dtype=jnp.bfloat16)
    out_bf16 = jax.block_until_ready(out_bf16)
    assert out_bf16.shape == (batch, seq, out_dim)
    assert jnp.allclose(out_bf16, ref, atol=5e-2, rtol=5e-2)

    print("KERNEL_OK")
</pallas_src>

<mosaic_0001>
module attributes {stable_mosaic.version = 11 : i64} {
  func.func @_mlp_block_kernel(%arg0: i32, %arg1: memref<16x128xf32, #tpu.memory_space<vmem>>, %arg2: memref<128x256xf32, #tpu.memory_space<vmem>>, %arg3: memref<1x256xf32, #tpu.memory_space<vmem>>, %arg4: memref<256x128xf32, #tpu.memory_space<vmem>>, %arg5: memref<1x128xf32, #tpu.memory_space<vmem>>, %arg6: memref<16x128xf32, #tpu.memory_space<vmem>>) attributes {dimension_semantics = [#tpu.dimension_semantics<parallel>], iteration_bounds = array<i64: 1>, scalar_prefetch = 0 : i64, scratch_operands = 0 : i64, tpu.core_type = #tpu.core_type<tc>, window_params = [{transform_indices = @transform_0, window_bounds = array<i64: 16, 128>}, {pipeline_mode = #tpu.pipeline_mode<synchronous>, transform_indices = @transform_1, window_bounds = array<i64: 128, 256>}, {pipeline_mode = #tpu.pipeline_mode<synchronous>, transform_indices = @transform_2, window_bounds = array<i64: 1, 256>}, {pipeline_mode = #tpu.pipeline_mode<synchronous>, transform_indices = @transform_3, window_bounds = array<i64: 256, 128>}, {pipeline_mode = #tpu.pipeline_mode<synchronous>, transform_indices = @transform_4, window_bounds = array<i64: 1, 128>}, {transform_indices = @transform_5, window_bounds = array<i64: 16, 128>}]} {
    %c0 = arith.constant 0 : index
    %c0_0 = arith.constant 0 : index
    %0 = vector.load %arg1[%c0, %c0_0] : memref<16x128xf32, #tpu.memory_space<vmem>>, vector<16x128xf32>
    %c0_1 = arith.constant 0 : index
    %c0_2 = arith.constant 0 : index
    %1 = vector.load %arg2[%c0_1, %c0_2] : memref<128x256xf32, #tpu.memory_space<vmem>>, vector<128x256xf32>
    %cst = arith.constant dense<0.000000e+00> : vector<16x256xf32>
    %2 = tpu.matmul %0, %1, %cst {dimension_numbers = #tpu.dot_dimension_numbers<[1], [0], [0], [1], [0, 0, 1, 1], [], []>} : vector<16x128xf32>, vector<128x256xf32>, vector<16x256xf32> -> vector<16x256xf32>
    %c0_3 = arith.constant 0 : index
    %c0_4 = arith.constant 0 : index
    %3 = vector.load %arg3[%c0_3, %c0_4] : memref<1x256xf32, #tpu.memory_space<vmem>>, vector<1x256xf32>
    %4 = vector.broadcast %3 : vector<1x256xf32> to vector<16x256xf32>
    %5 = arith.addf %2, %4 : vector<16x256xf32>
    %c0_5 = arith.constant 0 : index
    %c0_6 = arith.constant 0 : index
    %6 = vector.load %arg4[%c0_5, %c0_6] : memref<256x128xf32, #tpu.memory_space<vmem>>, vector<256x128xf32>
    %cst_7 = arith.constant dense<0.000000e+00> : vector<16x128xf32>
    %7 = tpu.matmul %5, %6, %cst_7 {dimension_numbers = #tpu.dot_dimension_numbers<[1], [0], [0], [1], [0, 0, 1, 1], [], []>} : vector<16x256xf32>, vector<256x128xf32>, vector<16x128xf32> -> vector<16x128xf32>
    %c0_8 = arith.constant 0 : index
    %c0_9 = arith.constant 0 : index
    %8 = vector.load %arg5[%c0_8, %c0_9] : memref<1x128xf32, #tpu.memory_space<vmem>>, vector<1x128xf32>
    %9 = vector.broadcast %8 : vector<1x128xf32> to vector<16x128xf32>
    %10 = arith.addf %7, %9 : vector<16x128xf32>
    %c0_10 = arith.constant 0 : index
    %c0_11 = arith.constant 0 : index
    %11 = vector.load %arg6[%c0_10, %c0_11] : memref<16x128xf32, #tpu.memory_space<vmem>>, vector<16x128xf32>
    tpu.vector_store %arg6[%c0_10, %c0_11], %10 {strides = array<i32>} : memref<16x128xf32, #tpu.memory_space<vmem>>, vector<16x128xf32>,
    return
  }
  func.func @transform_0(%arg0: i32) -> (i32, i32) {
    %c0_i32 = arith.constant 0 : i32
    %c0_i32_0 = arith.constant 0 : i32
    return %arg0, %c0_i32 : i32, i32
  }
  func.func @transform_1(%arg0: i32) -> (i32, i32) {
    %c0_i32 = arith.constant 0 : i32
    %c0_i32_0 = arith.constant 0 : i32
    %c0_i32_1 = arith.constant 0 : i32
    return %c0_i32, %c0_i32_0 : i32, i32
  }
  func.func @transform_2(%arg0: i32) -> (i32, i32) {
    %c0_i32 = arith.constant 0 : i32
    %c0_i32_0 = arith.constant 0 : i32
    %c0_i32_1 = arith.constant 0 : i32
    return %c0_i32, %c0_i32_0 : i32, i32
  }
  func.func @transform_3(%arg0: i32) -> (i32, i32) {
    %c0_i32 = arith.constant 0 : i32
    %c0_i32_0 = arith.constant 0 : i32
    %c0_i32_1 = arith.constant 0 : i32
    return %c0_i32, %c0_i32_0 : i32, i32
  }
  func.func @transform_4(%arg0: i32) -> (i32, i32) {
    %c0_i32 = arith.constant 0 : i32
    %c0_i32_0 = arith.constant 0 : i32
    %c0_i32_1 = arith.constant 0 : i32
    return %c0_i32, %c0_i32_0 : i32, i32
  }
  func.func @transform_5(%arg0: i32) -> (i32, i32) {
    %c0_i32 = arith.constant 0 : i32
    %c0_i32_0 = arith.constant 0 : i32
    return %arg0, %c0_i32 : i32, i32
  }
}

</mosaic_0001>

<bundles_post_ra>
// kernel: tpu_custom_call.1
= control target key start
LH: loop header
LB: loop body
LE: loop exit
PB: predicated region body
PF: predicated region fallthrough
CT: control target
= control target key end

     0   :  { %10 = vsyncpa [#allocation3], 0  ;;  %s521_s0 = inlined_call_operand.hbm [shape: f32[16,128], index: 0, kind: input, shape index: {}]   ;;  %s522_s1 = inlined_call_operand.hbm [shape: f32[128,256], index: 1, kind: input, shape index: {}]   ;;  %s523_s2 = inlined_call_operand.vmem [shape: f32[1,256], index: 2, kind: input, shape index: {}]   ;;  %s524_s3 = inlined_call_operand.hbm [shape: f32[256,128], index: 3, kind: input, shape index: {}]   ;;  %s525_s4 = inlined_call_operand.vmem [shape: f32[1,128], index: 4, kind: input, shape index: {}]   ;;  %s526_s5 = inlined_call_operand.hbm [shape: f32[16,128], index: 5, kind: output, shape index: {}]  }
   0x1   :  { %11 = vsyncpa [#allocation6], 0 }
   0x2   :  { %12 = vsyncpa [#allocation4], 0  ;;  %s453_s18 = smov [#allocation5]  }
   0x3   :  { %s30_s19 = sshll.u32 %s453_s18, 4  ;;  %s31_s19 = int_to_ptr.vmem [resolvable:$true] %s30_s19 }
   0x4   :  { %s375_s20 = scalar_lea.vmem %s31_s19, 4096  ;;  %p380_p1 = scmp.lt.s32.totalorder %s31_s19, %s31_s19 }
   0x5   :  { %p376_p0 = scmp.ne.s32.totalorder %s31_s19, %s375_s20  ;;  %p381_p2 = scmp.lt.s32.totalorder %s375_s20, %s375_s20 }
   0x7   :  { %p382_p3 = por %p381_p2, %p380_p1 }
   0x9   :  { %p383_p4 = pnand %p382_p3, %p376_p0 }
   0xb   :  { %386 = shalt.err (!%p383_p4)
}
   0xc   :  { %s454_s21 = smov 256   ;;  %s455_s22 = smov 16  }
   0xd   :  { %36 = dma.hbm_to_vmem [thread:$0]  %s522_s1, 4096, %s31_s19, [#allocation6], %s454_s21, %s454_s21, %s455_s22  }
   0xe   :  { %s456_s25 = smov [#allocation2]  }
   0xf   :  { %s18_s26 = sshll.u32 %s456_s25, 4  ;;  %s19_s26 = int_to_ptr.vmem [resolvable:$true] %s18_s26 }
  0x10   :  { %s395_s27 = scalar_lea.vmem %s19_s26, 256  ;;  %p400_p6 = scmp.lt.s32.totalorder %s19_s26, %s19_s26 }
  0x11   :  { %p396_p5 = scmp.ne.s32.totalorder %s19_s26, %s395_s27  ;;  %p401_p7 = scmp.lt.s32.totalorder %s395_s27, %s395_s27 }
  0x13   :  { %p402_p8 = por %p401_p7, %p400_p6 }
  0x15   :  { %p403_p9 = pnand %p402_p8, %p396_p5 }
  0x17   :  { %406 = shalt.err (!%p403_p9)
}
  0x18   :  { %s457_s28 = smov 128   ;;  %s458_s29 = smov 8  }
  0x19   :  { %24 = dma.hbm_to_vmem [thread:$0]  %s521_s0, 256, %s19_s26, [#allocation3], %s457_s28, %s457_s28, %s458_s29  }
  0x1a   :  { %s459_s1 = smov [#allocation7]  }
  0x1b   :  { %s44_s7 = sshll.u32 %s459_s1, 4  ;;  %s45_s7 = int_to_ptr.vmem [resolvable:$true] %s44_s7 }
  0x1c   :  { %s415_s8 = scalar_lea.vmem %s45_s7, 4096  ;;  %p420_p11 = scmp.lt.s32.totalorder %s45_s7, %s45_s7 }
  0x1d   :  { %p416_p10 = scmp.ne.s32.totalorder %s45_s7, %s415_s8  ;;  %p421_p12 = scmp.lt.s32.totalorder %s415_s8, %s415_s8 }
  0x1f   :  { %p422_p13 = por %p421_p12, %p420_p11 }
  0x21   :  { %p423_p0 = pnand %p422_p13, %p416_p10 }
  0x23   :  { %426 = shalt.err (!%p423_p0)
}
  0x24   :  { %50 = dma.hbm_to_vmem [thread:$0]  %s524_s3, 4096, %s45_s7, [#allocation6], %s457_s28, %s457_s28, %s458_s29  }
  0x25   :  { %447 = dma.done.wait [#allocation3], 256  }
  0x26   :  { %448 = vsyncadd [#allocation3], 4294967040 }
  0x27   :  { %449 = dma.done.wait [#allocation6], 8192  }
  0x28   :  { %450 = vsyncadd [#allocation6], 4294959104  ;;  %v460_v0 = vmov 0.0   ;;  %v95_v1 = vld [vmem:[#allocation5 + $0xf8] sm:$0xff]  ;;  %v94_v2 = vld [vmem:[#allocation5 + $0xf0] sm:$0xff] }
  0x29   :  { %172 = vmatprep.mubr.f32.mxu0 %v460_v0  ;;  %v93_v3 = vld [vmem:[#allocation5 + $0xe8] sm:$0xff]  ;;  %108 = vmatprep.subr.mxu0 %v95_v1  ;;  %v92_v4 = vld [vmem:[#allocation5 + $0xe0] sm:$0xff]  ;;  %v91_v5 = vld [vmem:[#allocation5 + $0xd8] sm:$0xff] }
  0x2a   :  { %109 = vmatpush1.msra.mxu0 %v94_v2  ;;  %v90_v6 = vld [vmem:[#allocation5 + $0xd0] sm:$0xff]  ;;  %v89_v7 = vld [vmem:[#allocation5 + $0xc8] sm:$0xff]  ;;  %v88_v8 = vld [vmem:[#allocation5 + $0xc0] sm:$0xff] }
  0x2b   :  { %110 = vmatprep.subr.mxu0 %v93_v3  ;;  %v87_v9 = vld [vmem:[#allocation5 + $0xb8] sm:$0xff]  ;;  %v86_v10 = vld [vmem:[#allocation5 + $0xb0] sm:$0xff]  ;;  %v85_v11 = vld [vmem:[#allocation5 + $0xa8] sm:$0xff] }
  0x2c   :  { %111 = vmatpush1.msra.mxu0 %v92_v4  ;;  %v84_v12 = vld [vmem:[#allocation5 + $0xa0] sm:$0xff]  ;;  %v83_v13 = vld [vmem:[#allocation5 + $0x98] sm:$0xff]  ;;  %v82_v14 = vld [vmem:[#allocation5 + $0x90] sm:$0xff] }
  0x2d   :  { %112 = vmatprep.subr.mxu0 %v91_v5  ;;  %v216_v15 = vld [vmem:[#allocation7 + $0xf8] sm:$0xff]  ;;  %v81_v17 = vld [vmem:[#allocation5 + $0x88] sm:$0xff]  ;;  %v215_v18 = vld [vmem:[#allocation7 + $0xf0] sm:$0xff] }
  0x2e   :  { %113 = vmatpush1.msra.mxu0 %v90_v6  ;;  %v200_v16 = vld [vmem:[#allocation7 + $0x78] sm:$0xff]  ;;  %320 = vmatprep.subr.mxu1 %v216_v15  ;;  %v199_v19 = vld [vmem:[#allocation7 + $0x70] sm:$0xff]  ;;  %v80_v20 = vld [vmem:[#allocation5 + $0x80] sm:$0xff] }
  0x2f   :  { %114 = vmatprep.subr.mxu0 %v89_v7  ;;  %321 = vmatpush3.msra.mxu1 %v200_v16  ;;  %v214_v21 = vld [vmem:[#allocation7 + $0xe8] sm:$0xff]  ;;  %v79_v22 = vld [vmem:[#allocation5 + $0x78] sm:$0xff]  ;;  %v78_v24 = vld [vmem:[#allocation5 + $0x70] sm:$0xff] }
  0x30   :  { %115 = vmatpush1.msra.mxu0 %v88_v8  ;;  %322 = vmatprep.subr.mxu1 %v215_v18  ;;  %v198_v23 = vld [vmem:[#allocation7 + $0x68] sm:$0xff]  ;;  %v213_v25 = vld [vmem:[#allocation7 + $0xe0] sm:$0xff]  ;;  %v212_v29 = vld [vmem:[#allocation7 + $0xd8] sm:$0xff] }
  0x31   :  { %116 = vmatprep.subr.mxu0 %v87_v9  ;;  %323 = vmatpush3.msra.mxu1 %v199_v19  ;;  %v77_v26 = vld [vmem:[#allocation5 + $0x68] sm:$0xff]  ;;  %v197_v27 = vld [vmem:[#allocation7 + $0x60] sm:$0xff]  ;;  %v75_v30 = vld [vmem:[#allocation5 + $0x58] sm:$0xff] }
  0x32   :  { %117 = vmatpush1.msra.mxu0 %v86_v10  ;;  %324 = vmatprep.subr.mxu1 %v214_v21  ;;  %v76_v28 = vld [vmem:[#allocation5 + $0x60] sm:$0xff]  ;;  %v196_v31 = vld [vmem:[#allocation7 + $0x58] sm:$0xff]  ;;  %v74_v32 = vld [vmem:[#allocation5 + $0x50] sm:$0xff] }
  0x33   :  { %118 = vmatprep.subr.mxu0 %v85_v11  ;;  %325 = vmatpush3.msra.mxu1 %v198_v23  ;;  %v211_v33 = vld [vmem:[#allocation7 + $0xd0] sm:$0xff]  ;;  %v73_v34 = vld [vmem:[#allocation5 + $0x48] sm:$0xff]  ;;  %v72_v36 = vld [vmem:[#allocation5 + $0x40] sm:$0xff] }
  0x34   :  { %119 = vmatpush1.msra.mxu0 %v84_v12  ;;  %326 = vmatprep.subr.mxu1 %v213_v25  ;;  %v195_v35 = vld [vmem:[#allocation7 + $0x50] sm:$0xff]  ;;  %v210_v37 = vld [vmem:[#allocation7 + $0xc8] sm:$0xff]  ;;  %v71_v38 = vld [vmem:[#allocation5 + $0x38] sm:$0xff] }
  0x35   :  { %120 = vmatprep.subr.mxu0 %v83_v13  ;;  %327 = vmatpush3.msra.mxu1 %v197_v27  ;;  %v194_v39 = vld [vmem:[#allocation7 + $0x48] sm:$0xff]  ;;  %v70_v40 = vld [vmem:[#allocation5 + $0x30] sm:$0xff]  ;;  %v209_v41 = vld [vmem:[#allocation7 + $0xc0] sm:$0xff] }
  0x36   :  { %121 = vmatpush1.msra.mxu0 %v82_v14  ;;  %328 = vmatprep.subr.mxu1 %v212_v29  ;;  %v69_v42 = vld [vmem:[#allocation5 + $0x28] sm:$0xff]  ;;  %v193_v43 = vld [vmem:[#allocation7 + $0x40] sm:$0xff]  ;;  %v208_v45 = vld [vmem:[#allocation7 + $0xb8] sm:$0xff] }
  0x37   :  { %122 = vmatprep.subr.mxu0 %v81_v17  ;;  %329 = vmatpush3.msra.mxu1 %v196_v31  ;;  %v68_v44 = vld [vmem:[#allocation5 + $0x20] sm:$0xff]  ;;  %v67_v46 = vld [vmem:[#allocation5 + $0x18] sm:$0xff]  ;;  %v66_v48 = vld [vmem:[#allocation5 + $0x10] sm:$0xff] }
  0x38   :  { %123 = vmatpush1.msra.mxu0 %v80_v20  ;;  %330 = vmatprep.subr.mxu1 %v211_v33  ;;  %v192_v47 = vld [vmem:[#allocation7 + $0x38] sm:$0xff]  ;;  %v207_v49 = vld [vmem:[#allocation7 + $0xb0] sm:$0xff]  ;;  %v65_v50 = vld [vmem:[#allocation5 + $0x8] sm:$0xff] }
  0x39   :  { %124 = vmatprep.subr.mxu0 %v79_v22  ;;  %331 = vmatpush3.msra.mxu1 %v195_v35  ;;  %v191_v51 = vld [vmem:[#allocation7 + $0x30] sm:$0xff]  ;;  %v64_v52 = vld [vmem:[#allocation5] sm:$0xff]  ;;  %v206_v53 = vld [vmem:[#allocation7 + $0xa8] sm:$0xff] }
  0x3a   :  { %125 = vmatpush1.msra.mxu0 %v78_v24  ;;  %332 = vmatprep.subr.mxu1 %v210_v37  ;;  %v62_v54 = vld [vmem:[#allocation2] sm:$0xff]  ;;  %v190_v55 = vld [vmem:[#allocation7 + $0x28] sm:$0xff]  ;;  %v205_v56 = vld [vmem:[#allocation7 + $0xa0] sm:$0xff] }
  0x3b   :  { %126 = vmatprep.subr.mxu0 %v77_v26  ;;  %333 = vmatpush3.msra.mxu1 %v194_v39  ;;  %v189_v57 = vld [vmem:[#allocation7 + $0x20] sm:$0xff]  ;;  %v204_v58 = vld [vmem:[#allocation7 + $0x98] sm:$0xff]  ;;  %v203_v61 = vld [vmem:[#allocation7 + $0x90] sm:$0xff] }
  0x3c   :  { %127 = vmatpush1.msra.mxu0 %v76_v28  ;;  %334 = vmatprep.subr.mxu1 %v209_v41  ;;  %v63_v59 = vld [vmem:[#allocation2 + $0x8] sm:$0xff]  ;;  %v187_v62 = vld [vmem:[#allocation7 + $0x10] sm:$0xff]  ;;  %v202_v63 = vld [vmem:[#allocation7 + $0x88] sm:$0xff] }
  0x3d   :  { %128 = vmatprep.subr.mxu0 %v75_v30  ;;  %335 = vmatpush3.msra.mxu1 %v193_v43  ;;  %v188_v60 = vld [vmem:[#allocation7 + $0x18] sm:$0xff]  ;;  %v186_v1 = vld [vmem:[#allocation7 + $0x8] sm:$0xff]  ;;  %v201_v2 = vld [vmem:[#allocation7 + $0x80] sm:$0xff] }
  0x3e   :  { %129 = vmatpush1.msra.mxu0 %v74_v32  ;;  %336 = vmatprep.subr.mxu1 %v208_v45  ;;  %v185_v3 = vld [vmem:[#allocation7] sm:$0xff]  ;;  %v96_v7 = vld [vmem:[%s523_s2] sm:$0x3]  ;;  %s461_s2 = smov [#allocation8]  }
  0x3f   :  { %130 = vmatprep.subr.mxu0 %v73_v34  ;;  %337 = vmatpush3.msra.mxu1 %v192_v47  ;;  %v319_v19 = vld [vmem:[%s525_s4] ss:$0 sm:$0xff]  ;;  %s306_s13 = sshll.u32 %s461_s2, 4  ;;  %s307_s13 = int_to_ptr.vmem [resolvable:$true] %s306_s13 }
  0x40   :  { %131 = vmatpush1.msra.mxu0 %v72_v36  ;;  %338 = vmatprep.subr.mxu1 %v207_v49  ;;  %s427_s14 = scalar_lea.vmem %s307_s13, 256  ;;  %p432_p2 = scmp.lt.s32.totalorder %s307_s13, %s307_s13 }
  0x41   :  { %132 = vmatprep.subr.mxu0 %v71_v38  ;;  %339 = vmatpush3.msra.mxu1 %v191_v51  ;;  %p428_p1 = scmp.ne.s32.totalorder %s307_s13, %s427_s14  ;;  %p433_p3 = scmp.lt.s32.totalorder %s427_s14, %s427_s14 }
  0x42   :  { %133 = vmatpush1.msra.mxu0 %v70_v40  ;;  %340 = vmatprep.subr.mxu1 %v206_v53 }
  0x43   :  { %134 = vmatprep.subr.mxu0 %v69_v42  ;;  %341 = vmatpush3.msra.mxu1 %v190_v55  ;;  %p434_p4 = por %p433_p3, %p432_p2 }
  0x44   :  { %135 = vmatpush1.msra.mxu0 %v68_v44  ;;  %342 = vmatprep.subr.mxu1 %v205_v56 }
  0x45   :  { %136 = vmatprep.subr.mxu0 %v67_v46  ;;  %343 = vmatpush3.msra.mxu1 %v189_v57  ;;  %p435_p5 = pnand %p434_p4, %p428_p1 }
  0x46   :  { %137 = vmatpush1.msra.mxu0 %v66_v48  ;;  %344 = vmatprep.subr.mxu1 %v204_v58 }
  0x47   :  { %138 = vmatprep.subr.mxu0 %v65_v50  ;;  %345 = vmatpush3.msra.mxu1 %v188_v60 }
  0x48   :  { %139 = vmatpush1.msra.mxu0 %v64_v52  ;;  %346 = vmatprep.subr.mxu1 %v203_v61 }
  0x49   :  { %173 = vmatmul.mubr.f32.vlgmr.msra.gmra.mxu0 %v62_v54  ;;  %347 = vmatpush3.msra.mxu1 %v187_v62 }
  0x4a   :  { %178 = vmatprep.mubr.f32.mxu0 %v460_v0  ;;  %348 = vmatprep.subr.mxu1 %v202_v63  ;;  %v98_v0 = vlaneseq }
  0x4b   :  { %349 = vmatpush3.msra.mxu1 %v186_v1 }
  0x4c   :  { %350 = vmatprep.subr.mxu1 %v201_v2  ;;  %v99_v4 = vshrl.u32 %v98_v0, 7 }
  0x4d   :  { %179 = vmatmul.mubr.f32.gmra.mxu0 %v63_v59  ;;  %351 = vmatpush3.msra.mxu1 %v185_v3 }
  0x4e   :  { %v104_v5 = vsub.s32 1, %v99_v4  ;;  %v100_v6 = vsub.s32 0, %v99_v4 }
  0x50   :  { %v105_v8 = vrot.slane %v96_v7, %v104_v5  ;;  %v101_v9 = vrot.slane %v96_v7, %v100_v6 }
 0x109   :  { %v174_v10 = vpop.f32.mrf.mxu0 }
 0x10a   :  { %v175_v13 = vadd.f32 %v174_v10, %v101_v9 }
 0x10b   :  { %v176_v11 = vpop.f32.mrf.mxu0 }
 0x10c   :  { %v177_v12 = vadd.f32 %v176_v11, %v105_v8 }
 0x10d   :  { %v180_v14 = vpop.f32.mrf.mxu0 }
 0x10e   :  { %288 = vmatprep.mubr.f32.mxu1 %v177_v12  ;;  %v181_v17 = vadd.f32 %v180_v14, %v101_v9 }
 0x10f   :  { %v182_v15 = vpop.f32.mrf.mxu0  ;;  %289 = vmatmul.mubr.f32.vlgmr.msra.gmra.mxu1 %v175_v13 }
 0x110   :  { %v183_v16 = vadd.f32 %v182_v15, %v105_v8 }
 0x112   :  { %293 = vmatprep.mubr.f32.mxu1 %v183_v16 }
 0x113   :  { %294 = vmatmul.mubr.f32.gmra.mxu1 %v181_v17 }
 0x1cf   :  { %v352_v18 = vpop.f32.mrf.mxu1 }
 0x1d1   :  { %v353_v20 = vpop.f32.mrf.mxu1 }
 0x1d2   :  { %v354_v21 = vadd.f32 %v353_v20, %v352_v18 }
 0x1d3   :  { %v355_v22 = vpop.f32.mrf.mxu1 }
 0x1d4   :  { %v291_v23 = vadd.f32 %v354_v21, %v319_v19 }
 0x1d5   :  { %v356_v24 = vpop.f32.mrf.mxu1 }
 0x1d6   :  { %299 = vst [vmem:[#allocation8] sm:$0xff] %v291_v23  ;;  %v357_v25 = vadd.f32 %v356_v24, %v355_v22 }
 0x1d8   :  { %v296_v26 = vadd.f32 %v357_v25, %v319_v19 }
 0x1da   :  { %300 = vst [vmem:[#allocation8 + $0x8] sm:$0xff] %v296_v26 }
 0x1db   :  { %438 = shalt.err (!%p435_p5)
}
 0x1dc   :  { %312 = dma.vmem_to_hbm [thread:$0]  %s307_s13, 256, %s526_s5, [#allocation4], %s457_s28, %s457_s28, %s458_s29  }
 0x1dd   :  { %451 = dma.done.wait [#allocation4], 256  }
 0x1de   :  { %452 = vsyncadd [#allocation4], 4294967040 }
 0x1df   :  { %316 = vsyncpa [#allocation3], 1 }
 0x1e0   :  { %317 = vsyncpa [#allocation6], 1 }
 0x1e1   :  { %318 = vsyncpa [#allocation4], 1 }

</bundles_post_ra>
